<compile_context>
chip_gen: v7x
topology: tpu7x:2x2x1
jax: 0.10.0
libtpu: 0.0.40
codegen_flags: <defaults>
</compile_context>

<pallas_src>
import math
import functools

import jax
import jax.numpy as jnp
from jax import lax
from jax.experimental import pallas as pl
from jax.experimental.pallas import tpu as pltpu


# ----------------------------------------------------------------------------
# Kernel
# ----------------------------------------------------------------------------
def embed_kernel(ids_ref,                        # SMEM scalar-prefetch: (B*S_pad,) int32
                 pe_ref, emb_ref, w_ref, b_ref,  # VMEM inputs
                 o_ref,                          # VMEM output block (1, TS, Hp)
                 x_scr,                          # VMEM scratch (TS, Hp) f32
                 *, seq_tile, seq_pad, scale):
    bi = pl.program_id(0)
    ti = pl.program_id(1)
    base = bi * seq_pad + ti * seq_tile

    # Fused token-embedding gather: ids live in SMEM, the table in VMEM.
    def gather_row(r, carry):
        tok = ids_ref[base + r]
        x_scr[pl.ds(r, 1), :] = emb_ref[pl.ds(tok, 1), :]
        return carry

    # Short fixed trip-count -> unroll so the LLO scheduler can interleave
    # the row loads/stores; fall back to a rolled loop for big tiles.
    lax.fori_loop(0, seq_tile, gather_row, 0, unroll=seq_tile <= 32)

    # x = tok_emb * sqrt(d_x) + positional encoding   (f32 elementwise, VPU)
    x = x_scr[...] * scale + pe_ref[...]

    # r = linear(x) + 1 : bf16 MXU inputs, f32 accumulation.
    r = (jnp.dot(x.astype(jnp.bfloat16), w_ref[...],
                 preferred_element_type=jnp.float32)
         + b_ref[...] + 1.0)

    # z = x * r  (dropout is the identity in eval mode)
    o_ref[0] = x * r


# ----------------------------------------------------------------------------
# Wrapper
# ----------------------------------------------------------------------------
def _round_up(x, m):
    return (x + m - 1) // m * m


def embedding_multilinear_sinusoidal(params, input_ids, *, seq_tile=128):
    """params: tok_emb (V,H) f32, lin_w (H,H) f32 stored as (in,out), lin_b (H,) f32,
    pe (max_len,H) f32.  input_ids: (B,S) int32.  Returns (B,S,H) f32."""
    emb = params["tok_emb"]
    w = params["lin_w"]
    bias = params["lin_b"]
    pe = params["pe"]
    V, H = emb.shape
    B, S = input_ids.shape

    Hp = _round_up(H, 128)                      # lane-dense hidden dim
    TS = min(seq_tile, _round_up(S, 8))         # sublane-aligned seq tile
    S_pad = _round_up(S, TS)

    emb_p = jnp.pad(emb, ((0, 0), (0, Hp - H)))                          # (V, Hp)   f32
    w_p = jnp.pad(w, ((0, Hp - H), (0, Hp - H))).astype(jnp.bfloat16)    # (Hp, Hp)  bf16
    b_p = jnp.pad(bias.reshape(1, H), ((0, 0), (0, Hp - H)))             # (1, Hp)   f32
    pe_p = jnp.pad(pe[:S], ((0, S_pad - S), (0, Hp - H)))                # (S_pad,Hp) f32
    ids_p = jnp.pad(input_ids.astype(jnp.int32),
                    ((0, 0), (0, S_pad - S))).reshape(-1)                # (B*S_pad,) int32

    kern = functools.partial(embed_kernel, seq_tile=TS, seq_pad=S_pad,
                             scale=float(math.sqrt(H)))

    out = pl.pallas_call(
        kern,
        out_shape=jax.ShapeDtypeStruct((B, S_pad, Hp), jnp.float32),
        grid_spec=pltpu.PrefetchScalarGridSpec(
            num_scalar_prefetch=1,
            grid=(B, S_pad // TS),
            in_specs=[
                pl.BlockSpec((TS, Hp), lambda b, t, ids: (t, 0)),    # pe tile
                pl.BlockSpec((V, Hp), lambda b, t, ids: (0, 0)),     # embedding table (resident)
                pl.BlockSpec((Hp, Hp), lambda b, t, ids: (0, 0)),    # linear weight (bf16, resident)
                pl.BlockSpec((1, Hp), lambda b, t, ids: (0, 0)),     # linear bias (resident)
            ],
            out_specs=pl.BlockSpec((1, TS, Hp), lambda b, t, ids: (b, t, 0)),
            scratch_shapes=[pltpu.VMEM((TS, Hp), jnp.float32)],
        ),
        compiler_params=pltpu.CompilerParams(
            dimension_semantics=("parallel", "parallel")),
    )(ids_p, pe_p, emb_p, w_p, b_p)

    return out[:, :S, :H]


# ----------------------------------------------------------------------------
# Parameters & pure-JAX reference (mirrors the PyTorch module in eval mode)
# ----------------------------------------------------------------------------
def sinusoidal_pe(max_length, d_x):
    position = jnp.arange(0.0, max_length, dtype=jnp.float32)[:, None]
    div_term = jnp.exp(jnp.arange(0.0, d_x, 2, dtype=jnp.float32)
                       * (-math.log(10000.0) / d_x))
    pe = jnp.zeros((max_length, d_x), jnp.float32)
    pe = pe.at[:, 0::2].set(jnp.sin(position * div_term))
    pe = pe.at[:, 1::2].set(jnp.cos(position * div_term))
    return pe


def init_params(key, d_vocab, d_x, max_length):
    k1, k2, k3 = jax.random.split(key, 3)
    std = 1.0 / math.sqrt(d_x)
    return {
        "tok_emb": jax.random.normal(k1, (d_vocab, d_x), jnp.float32) * std,
        "lin_w": jax.random.normal(k2, (d_x, d_x), jnp.float32) * std,  # (in, out) = W.T
        "lin_b": jax.random.normal(k3, (d_x,), jnp.float32) * 0.1,
        "pe": sinusoidal_pe(max_length, d_x),
    }


def ref_forward(params, input_ids):
    H = params["tok_emb"].shape[1]
    S = input_ids.shape[1]
    tok = params["tok_emb"][input_ids] * math.sqrt(H)
    x = tok + params["pe"][None, :S, :]
    r = (jnp.dot(x, params["lin_w"], precision=jax.lax.Precision.HIGHEST)
         + params["lin_b"] + 1.0)
    return x * r


# ----------------------------------------------------------------------------
if __name__ == "__main__":
    d_vocab, d_x, max_length = 64, 32, 200
    batch, seq = 2, 8

    key = jax.random.PRNGKey(0)
    pkey, dkey = jax.random.split(key)
    params = init_params(pkey, d_vocab, d_x, max_length)
    input_ids = jax.random.randint(dkey, (batch, seq), 0, d_vocab, dtype=jnp.int32)

    z = embedding_multilinear_sinusoidal(params, input_ids)
    z = jax.block_until_ready(z)
    assert z.shape == (batch, seq, d_x)
    assert z.dtype == jnp.float32

    ref = ref_forward(params, input_ids)
    max_err = float(jnp.max(jnp.abs(z - ref)))
    # bf16 MXU inputs (f32 accumulation) vs f32 reference -> loosened tolerance.
    assert jnp.allclose(z, ref, atol=5e-2, rtol=5e-2), f"max_err={max_err}"

    print("KERNEL_OK")
</pallas_src>

<mosaic_0001>
module attributes {stable_mosaic.version = 11 : i64} {
  func.func @embed_kernel(%arg0: i32, %arg1: i32, %arg2: memref<16xi32, #tpu.memory_space<smem>>, %arg3: memref<8x128xf32, #tpu.memory_space<vmem>>, %arg4: memref<64x128xf32, #tpu.memory_space<vmem>>, %arg5: memref<128x128xbf16, #tpu.memory_space<vmem>>, %arg6: memref<1x128xf32, #tpu.memory_space<vmem>>, %arg7: memref<1x8x128xf32, #tpu.memory_space<vmem>>, %arg8: memref<8x128xf32, #tpu.memory_space<vmem>>) attributes {dimension_semantics = [#tpu.dimension_semantics<parallel>, #tpu.dimension_semantics<parallel>], iteration_bounds = array<i64: 2, 1>, scalar_prefetch = 1 : i64, scratch_operands = 1 : i64, tpu.core_type = #tpu.core_type<tc>, window_params = [{transform_indices = @transform_0, window_bounds = array<i64: 8, 128>}, {pipeline_mode = #tpu.pipeline_mode<synchronous>, transform_indices = @transform_1, window_bounds = array<i64: 64, 128>}, {pipeline_mode = #tpu.pipeline_mode<synchronous>, transform_indices = @transform_2, window_bounds = array<i64: 128, 128>}, {pipeline_mode = #tpu.pipeline_mode<synchronous>, transform_indices = @transform_3, window_bounds = array<i64: 1, 128>}, {transform_indices = @transform_4, window_bounds = array<i64: 1, 8, 128>}]} {
    %c8_i32 = arith.constant 8 : i32
    %0 = arith.muli %arg0, %c8_i32 : i32
    %c8_i32_0 = arith.constant 8 : i32
    %1 = arith.muli %arg1, %c8_i32_0 : i32
    %2 = arith.addi %0, %1 : i32
    %c0_i32 = arith.constant 0 : i32
    %3 = arith.addi %2, %c0_i32 : i32
    %4 = arith.index_cast %3 : i32 to index
    %5 = memref.load %arg2[%4] : memref<16xi32, #tpu.memory_space<smem>>
    %6 = arith.index_cast %5 : i32 to index
    %c0 = arith.constant 0 : index
    %7 = vector.load %arg4[%6, %c0] : memref<64x128xf32, #tpu.memory_space<vmem>>, vector<1x128xf32>
    %8 = arith.index_cast %c0_i32 : i32 to index
    %c0_1 = arith.constant 0 : index
    %9 = vector.load %arg8[%8, %c0_1] : memref<8x128xf32, #tpu.memory_space<vmem>>, vector<1x128xf32>
    tpu.vector_store %arg8[%8, %c0_1], %7 {strides = array<i32>} : memref<8x128xf32, #tpu.memory_space<vmem>>, vector<1x128xf32>,
    %c1_i32 = arith.constant 1 : i32
    %10 = arith.addi %2, %c1_i32 : i32
    %11 = arith.index_cast %10 : i32 to index
    %12 = memref.load %arg2[%11] : memref<16xi32, #tpu.memory_space<smem>>
    %13 = arith.index_cast %12 : i32 to index
    %c0_2 = arith.constant 0 : index
    %14 = vector.load %arg4[%13, %c0_2] : memref<64x128xf32, #tpu.memory_space<vmem>>, vector<1x128xf32>
    %15 = arith.index_cast %c1_i32 : i32 to index
    %c0_3 = arith.constant 0 : index
    %16 = vector.load %arg8[%15, %c0_3] : memref<8x128xf32, #tpu.memory_space<vmem>>, vector<1x128xf32>
    tpu.vector_store %arg8[%15, %c0_3], %14 {strides = array<i32>} : memref<8x128xf32, #tpu.memory_space<vmem>>, vector<1x128xf32>,
    %c2_i32 = arith.constant 2 : i32
    %17 = arith.addi %2, %c2_i32 : i32
    %18 = arith.index_cast %17 : i32 to index
    %19 = memref.load %arg2[%18] : memref<16xi32, #tpu.memory_space<smem>>
    %20 = arith.index_cast %19 : i32 to index
    %c0_4 = arith.constant 0 : index
    %21 = vector.load %arg4[%20, %c0_4] : memref<64x128xf32, #tpu.memory_space<vmem>>, vector<1x128xf32>
    %22 = arith.index_cast %c2_i32 : i32 to index
    %c0_5 = arith.constant 0 : index
    %23 = vector.load %arg8[%22, %c0_5] : memref<8x128xf32, #tpu.memory_space<vmem>>, vector<1x128xf32>
    tpu.vector_store %arg8[%22, %c0_5], %21 {strides = array<i32>} : memref<8x128xf32, #tpu.memory_space<vmem>>, vector<1x128xf32>,
    %c3_i32 = arith.constant 3 : i32
    %24 = arith.addi %2, %c3_i32 : i32
    %25 = arith.index_cast %24 : i32 to index
    %26 = memref.load %arg2[%25] : memref<16xi32, #tpu.memory_space<smem>>
    %27 = arith.index_cast %26 : i32 to index
    %c0_6 = arith.constant 0 : index
    %28 = vector.load %arg4[%27, %c0_6] : memref<64x128xf32, #tpu.memory_space<vmem>>, vector<1x128xf32>
    %29 = arith.index_cast %c3_i32 : i32 to index
    %c0_7 = arith.constant 0 : index
    %30 = vector.load %arg8[%29, %c0_7] : memref<8x128xf32, #tpu.memory_space<vmem>>, vector<1x128xf32>
    tpu.vector_store %arg8[%29, %c0_7], %28 {strides = array<i32>} : memref<8x128xf32, #tpu.memory_space<vmem>>, vector<1x128xf32>,
    %c4_i32 = arith.constant 4 : i32
    %31 = arith.addi %2, %c4_i32 : i32
    %32 = arith.index_cast %31 : i32 to index
    %33 = memref.load %arg2[%32] : memref<16xi32, #tpu.memory_space<smem>>
    %34 = arith.index_cast %33 : i32 to index
    %c0_8 = arith.constant 0 : index
    %35 = vector.load %arg4[%34, %c0_8] : memref<64x128xf32, #tpu.memory_space<vmem>>, vector<1x128xf32>
    %36 = arith.index_cast %c4_i32 : i32 to index
    %c0_9 = arith.constant 0 : index
    %37 = vector.load %arg8[%36, %c0_9] : memref<8x128xf32, #tpu.memory_space<vmem>>, vector<1x128xf32>
    tpu.vector_store %arg8[%36, %c0_9], %35 {strides = array<i32>} : memref<8x128xf32, #tpu.memory_space<vmem>>, vector<1x128xf32>,
    %c5_i32 = arith.constant 5 : i32
    %38 = arith.addi %2, %c5_i32 : i32
    %39 = arith.index_cast %38 : i32 to index
    %40 = memref.load %arg2[%39] : memref<16xi32, #tpu.memory_space<smem>>
    %41 = arith.index_cast %40 : i32 to index
    %c0_10 = arith.constant 0 : index
    %42 = vector.load %arg4[%41, %c0_10] : memref<64x128xf32, #tpu.memory_space<vmem>>, vector<1x128xf32>
    %43 = arith.index_cast %c5_i32 : i32 to index
    %c0_11 = arith.constant 0 : index
    %44 = vector.load %arg8[%43, %c0_11] : memref<8x128xf32, #tpu.memory_space<vmem>>, vector<1x128xf32>
    tpu.vector_store %arg8[%43, %c0_11], %42 {strides = array<i32>} : memref<8x128xf32, #tpu.memory_space<vmem>>, vector<1x128xf32>,
    %c6_i32 = arith.constant 6 : i32
    %45 = arith.addi %2, %c6_i32 : i32
    %46 = arith.index_cast %45 : i32 to index
    %47 = memref.load %arg2[%46] : memref<16xi32, #tpu.memory_space<smem>>
    %48 = arith.index_cast %47 : i32 to index
    %c0_12 = arith.constant 0 : index
    %49 = vector.load %arg4[%48, %c0_12] : memref<64x128xf32, #tpu.memory_space<vmem>>, vector<1x128xf32>
    %50 = arith.index_cast %c6_i32 : i32 to index
    %c0_13 = arith.constant 0 : index
    %51 = vector.load %arg8[%50, %c0_13] : memref<8x128xf32, #tpu.memory_space<vmem>>, vector<1x128xf32>
    tpu.vector_store %arg8[%50, %c0_13], %49 {strides = array<i32>} : memref<8x128xf32, #tpu.memory_space<vmem>>, vector<1x128xf32>,
    %c7_i32 = arith.constant 7 : i32
    %52 = arith.addi %2, %c7_i32 : i32
    %53 = arith.index_cast %52 : i32 to index
    %54 = memref.load %arg2[%53] : memref<16xi32, #tpu.memory_space<smem>>
    %55 = arith.index_cast %54 : i32 to index
    %c0_14 = arith.constant 0 : index
    %56 = vector.load %arg4[%55, %c0_14] : memref<64x128xf32, #tpu.memory_space<vmem>>, vector<1x128xf32>
    %57 = arith.index_cast %c7_i32 : i32 to index
    %c0_15 = arith.constant 0 : index
    %58 = vector.load %arg8[%57, %c0_15] : memref<8x128xf32, #tpu.memory_space<vmem>>, vector<1x128xf32>
    tpu.vector_store %arg8[%57, %c0_15], %56 {strides = array<i32>} : memref<8x128xf32, #tpu.memory_space<vmem>>, vector<1x128xf32>,
    %c8_i32_16 = arith.constant 8 : i32
    %c0_17 = arith.constant 0 : index
    %c0_18 = arith.constant 0 : index
    %59 = vector.load %arg8[%c0_17, %c0_18] : memref<8x128xf32, #tpu.memory_space<vmem>>, vector<8x128xf32>
    %cst = arith.constant 5.65685415 : f32
    %60 = vector.broadcast %cst : f32 to vector<8x128xf32>
    %61 = arith.mulf %59, %60 : vector<8x128xf32>
    %c0_19 = arith.constant 0 : index
    %c0_20 = arith.constant 0 : index
    %62 = vector.load %arg3[%c0_19, %c0_20] : memref<8x128xf32, #tpu.memory_space<vmem>>, vector<8x128xf32>
    %63 = arith.addf %61, %62 : vector<8x128xf32>
    %64 = arith.truncf %63 : vector<8x128xf32> to vector<8x128xbf16>
    %c0_21 = arith.constant 0 : index
    %c0_22 = arith.constant 0 : index
    %65 = vector.load %arg5[%c0_21, %c0_22] : memref<128x128xbf16, #tpu.memory_space<vmem>>, vector<128x128xbf16>
    %cst_23 = arith.constant dense<0.000000e+00> : vector<8x128xf32>
    %66 = tpu.matmul %64, %65, %cst_23 {dimension_numbers = #tpu.dot_dimension_numbers<[1], [0], [0], [1], [0, 0, 1, 1], [], []>} : vector<8x128xbf16>, vector<128x128xbf16>, vector<8x128xf32> -> vector<8x128xf32>
    %c0_24 = arith.constant 0 : index
    %c0_25 = arith.constant 0 : index
    %67 = vector.load %arg6[%c0_24, %c0_25] : memref<1x128xf32, #tpu.memory_space<vmem>>, vector<1x128xf32>
    %68 = vector.broadcast %67 : vector<1x128xf32> to vector<8x128xf32>
    %69 = arith.addf %66, %68 : vector<8x128xf32>
    %cst_26 = arith.constant 1.000000e+00 : f32
    %70 = vector.broadcast %cst_26 : f32 to vector<8x128xf32>
    %71 = arith.addf %69, %70 : vector<8x128xf32>
    %72 = arith.mulf %63, %71 : vector<8x128xf32>
    %c0_27 = arith.constant 0 : index
    %c0_28 = arith.constant 0 : index
    %c0_29 = arith.constant 0 : index
    %73 = vector.load %arg7[%c0_27, %c0_28, %c0_29] : memref<1x8x128xf32, #tpu.memory_space<vmem>>, vector<1x8x128xf32>
    %74 = vector.shape_cast %73 : vector<1x8x128xf32> to vector<8x128xf32>
    %75 = vector.shape_cast %72 : vector<8x128xf32> to vector<1x8x128xf32>
    tpu.vector_store %arg7[%c0_27, %c0_28, %c0_29], %75 {strides = array<i32>} : memref<1x8x128xf32, #tpu.memory_space<vmem>>, vector<1x8x128xf32>,
    return
  }
  func.func @transform_0(%arg0: i32, %arg1: i32, %arg2: memref<16xi32, #tpu.memory_space<smem>>) -> (i32, i32) {
    %c0_i32 = arith.constant 0 : i32
    %c0_i32_0 = arith.constant 0 : i32
    return %arg1, %c0_i32 : i32, i32
  }
  func.func @transform_1(%arg0: i32, %arg1: i32, %arg2: memref<16xi32, #tpu.memory_space<smem>>) -> (i32, i32) {
    %c0_i32 = arith.constant 0 : i32
    %c0_i32_0 = arith.constant 0 : i32
    %c0_i32_1 = arith.constant 0 : i32
    return %c0_i32, %c0_i32_0 : i32, i32
  }
  func.func @transform_2(%arg0: i32, %arg1: i32, %arg2: memref<16xi32, #tpu.memory_space<smem>>) -> (i32, i32) {
    %c0_i32 = arith.constant 0 : i32
    %c0_i32_0 = arith.constant 0 : i32
    %c0_i32_1 = arith.constant 0 : i32
    return %c0_i32, %c0_i32_0 : i32, i32
  }
  func.func @transform_3(%arg0: i32, %arg1: i32, %arg2: memref<16xi32, #tpu.memory_space<smem>>) -> (i32, i32) {
    %c0_i32 = arith.constant 0 : i32
    %c0_i32_0 = arith.constant 0 : i32
    %c0_i32_1 = arith.constant 0 : i32
    return %c0_i32, %c0_i32_0 : i32, i32
  }
  func.func @transform_4(%arg0: i32, %arg1: i32, %arg2: memref<16xi32, #tpu.memory_space<smem>>) -> (i32, i32, i32) {
    %c0_i32 = arith.constant 0 : i32
    %c0_i32_0 = arith.constant 0 : i32
    return %arg0, %arg1, %c0_i32 : i32, i32, i32
  }
}

</mosaic_0001>

<bundles_post_ra>
// kernel: tpu_custom_call.1
= control target key start
LH: loop header
LB: loop body
LE: loop exit
PB: predicated region body
PF: predicated region fallthrough
CT: control target
= control target key end

     0   :  { %s1126_s0 = inlined_call_operand.hbm [shape: s32[16], index: 0, kind: input, shape index: {}]   ;;  %s1127_s1 = inlined_call_operand.hbm [shape: f32[8,128], index: 1, kind: input, shape index: {}]   ;;  %s1128_s2 = inlined_call_operand.hbm [shape: f32[64,128], index: 2, kind: input, shape index: {}]   ;;  %s1129_s3 = inlined_call_operand.hbm [shape: bf16[128,128], index: 3, kind: input, shape index: {}]   ;;  %s1130_s4 = inlined_call_operand.vmem [shape: f32[1,128], index: 4, kind: input, shape index: {}]   ;;  %s1131_s5 = inlined_call_operand.hbm [shape: f32[2,8,128], index: 5, kind: output, shape index: {}]  }
   0x1   :  { %s673_s20 = scalar_lea.hbm %s1126_s0, 16 }
   0x2   :  { %p674_p0 = scmp.ne.s32.totalorder %s1126_s0, %s673_s20  ;;  %p677_p1 = scmp.lt.u32.totalorder %s673_s20, %s1126_s0 }
   0x4   :  { %p679_p2 = pnand %p677_p1, %p674_p0 }
   0x6   :  { %682 = shalt.err (!%p679_p2)  }
   0x7   :  { %s857_s25 = smov [#allocation4]  }
   0x8   :  { %11 = dma.hbm_to_smem %s1126_s0, 16, %s857_s25, [#allocation3] }
   0x9   :  { %819 = dma.done.wait [#allocation3], 16 }
   0xa   :  { %820 = vsyncadd [#allocation3], 4294967280 }
   0xb   :  { %13 = sfence }
   0xc   :  { %14 = vsyncpa [#allocation6], 0 }
   0xd   :  { %15 = vsyncpa [#allocation9], 0 }
   0xe   :  { %16 = vsyncpa [#allocation7], 0 }
   0xf   :  { %18 = vsyncpa [#allocation7 + $0x1], 0  ;;  %s910_s28 = smov 0   ;;  %s912_s29 = smov 0  }
  0x10   :  { %s914_s30 = smov 0   ;;  %s916_s6 = smov 0  }
  0x11   :  { %s918_s7 = smov 0   ;;  %s920_s8 = smov 0  }
  0x12 LB: > { %s518_s0 = sadd.s32 4294967295, %s855_s8   ;;  %s519_s9 = sadd.s32 4294967294, %s855_s8   ;;  %s855_s8 = sphi %s920_s8, %s24_s8   ;;  %s851_s7 = sphi %s918_s7, %s1153_s7   ;;  %s847_s6 = sphi %s916_s6, %s1152_s6   ;;  %s843_s30 = sphi %s914_s30, %s1151_s30   ;;  %s839_s29 = sphi %s912_s29, %s1150_s29   ;;  %s835_s28 = sphi %s910_s28, %s1149_s28  }
  0x13   : > { %s36_s10 = sadd.s32 1, %s851_s7  ;;  %s134_s11 = sadd.s32 1, %s843_s30 }
  0x14   : > { %p38_p3 = scmp.ge.s32.totalorder %s36_s10, 2  ;;  %p144_p4 = scmp.ne.s32.totalorder %s843_s30, %s839_s29 }
  0x15   : > { %p145_p5 = scmp.eq.s32.totalorder %s518_s0, 1  ;;  %p150_p6 = scmp.ne.s32.totalorder %s839_s29, %s835_s28 }
  0x16   : > { %s1155_s10 = smov (%p38_p3, %s36_s10), 0  ;;  %p151_p8 = scmp.eq.s32.totalorder %s519_s9, 1 }
  0x17   : > { %1137 = sst [smem:[#allocation16_spill]] %s1155_s10  ;;  %p950_p7 = por %p145_p5, %p144_p4 }
  0x18   : > { %s129_s13 = ssub.s32 %s851_s7, %s1155_s10  ;;  %p520_p9 = scmp.ge.s32.totalorder %s855_s8, 1 }
  0x19   : > { %s1138_s12 = scalar_select %p950_p7, 1, 0 }
  0x1a   : > { %p132_p10 = scmp.eq.s32.totalorder %s129_s13, 0  ;;  %p957_p11 = por %p151_p8, %p150_p6 }
  0x1b   : > { %p158_p12 = scmp.lt.s32.totalorder %s855_s8, 3  ;;  %p969_p0 = scmp.eq.s32.totalorder %s518_s0, 0 }
  0x1c   : > { %s1139_s14 = scalar_select %p957_p11, 1, 0 }
  0x1d   : > { %s963_s15 = scalar_select %p132_p10, %s843_s30, %s134_s11  }
  0x1e   : > { %p965_p13 = pnand %p520_p9, %p158_p12  ;;  %s858_s18 = smov [#allocation8]  }
  0x1f   : > { %s1141_s17 = scalar_select %p969_p0, 1, 0 }
  0x20   : > { %s1140_s16 = scalar_select %p965_p13, 1, 0 }
  0x21   : > { %p586_p1 = pneg %p965_p13  ;;  %s183_s19 = sshll.u32 %s858_s18, 4  ;;  %s184_s19 = int_to_ptr.vmem [resolvable:$true] %s183_s19 }
  0x22   : > { %s859_s21 = smov [#allocation5]   ;;  %s683_s25 = scalar_lea.hbm %s1128_s2, 1024 }
  0x23   : > { %p977_p2 = pnand %p969_p0, %p586_p1  ;;  %s173_s22 = sshll.u32 %s859_s21, 4  ;;  %s174_s22 = int_to_ptr.vmem [resolvable:$true] %s173_s22 }
  0x24   : > { %p684_p3 = scmp.ne.s32.totalorder %s1128_s2, %s683_s25  ;;  %p690_p8 = scmp.lt.u32.totalorder %s683_s25, %s1128_s2 }
  0x25   : > { %p989_p4 = pneg %p977_p2 }
  0x27   : > { %p686_p5 = pnand %p989_p4, %p684_p3 }
  0x29   : > { %p687_p6 = pneg %p686_p5 }
  0x2b   : > { %p692_p9 = pnand %p690_p8, %p687_p6 }
  0x2d   : > { %695 = shalt.err (!%p692_p9)
}
  0x2e   : > { %s696_s13 = scalar_lea.vmem %s184_s19, 1024  ;;  %p704_p11 = scmp.lt.s32.totalorder %s184_s19, %s184_s19 }
  0x2f   : > { %p697_p10 = scmp.ne.s32.totalorder %s184_s19, %s696_s13  ;;  %p705_p7 = scmp.lt.s32.totalorder %s696_s13, %s696_s13 }
  0x31   : > { %p699_p12 = pnand %p697_p10, %p989_p4  ;;  %p706_p0 = por %p705_p7, %p704_p11 }
  0x33   : > { %p700_p1 = pneg %p699_p12 }
  0x35   : > { %p707_p13 = pnand %p706_p0, %p700_p1 }
  0x37   : > { %710 = shalt.err (!%p707_p13)
}
  0x38   : > { %s860_s18 = smov 128   ;;  %s861_s21 = smov 8  }
  0x39   : > { %592 = dma.hbm_to_vmem [thread:$0]  (!%p977_p2), %s1128_s2, 1024, %s184_s19, [#allocation9], %s860_s18, %s860_s18, %s861_s21  }
  0x3a   : > { %s711_s27 = scalar_lea.hbm %s1127_s1, 128 }
  0x3b   : > { %p712_p7 = scmp.ne.s32.totalorder %s1127_s1, %s711_s27  ;;  %p718_p0 = scmp.lt.u32.totalorder %s711_s27, %s1127_s1 }
  0x3d   : > { %p714_p11 = pnand %p712_p7, %p989_p4 }
  0x3f   : > { %p715_p13 = pneg %p714_p11 }
  0x41   : > { %p720_p3 = pnand %p718_p0, %p715_p13 }
  0x43   : > { %723 = shalt.err (!%p720_p3)
}
  0x44   : > { %s724_s23 = scalar_lea.vmem %s174_s22, 128  ;;  %p732_p9 = scmp.lt.s32.totalorder %s174_s22, %s174_s22 }
  0x45   : > { %p725_p5 = scmp.ne.s32.totalorder %s174_s22, %s724_s23  ;;  %p733_p10 = scmp.lt.s32.totalorder %s724_s23, %s724_s23 }
  0x47   : > { %p727_p6 = pnand %p725_p5, %p989_p4  ;;  %p734_p12 = por %p733_p10, %p732_p9 }
  0x49   : > { %p728_p8 = pneg %p727_p6 }
  0x4b   : > { %p735_p1 = pnand %p734_p12, %p728_p8 }
  0x4d   : > { %738 = shalt.err (!%p735_p1)
}
  0x4e   : > { %589 = dma.hbm_to_vmem [thread:$0]  (!%p977_p2), %s1127_s1, 128, %s174_s22, [#allocation6]  }
  0x4f   : > { %s862_s10 = smov [#allocation10]   ;;  %s739_s26 = scalar_lea.hbm %s1129_s3, 1024 }
  0x50   : > { %s196_s21 = sshll.u32 %s862_s10, 4  ;;  %p740_p7 = scmp.ne.s32.totalorder %s1129_s3, %s739_s26  ;;  %s197_s21 = int_to_ptr.vmem [resolvable:$true] %s196_s21 }
  0x51   : > { %p746_p0 = scmp.lt.u32.totalorder %s739_s26, %s1129_s3 }
  0x52   : > { %p742_p11 = pnand %p740_p7, %p989_p4 }
  0x54   : > { %p743_p13 = pneg %p742_p11 }
  0x56   : > { %p748_p3 = pnand %p746_p0, %p743_p13 }
  0x58   : > { %751 = shalt.err (!%p748_p3)
}
  0x59   : > { %s752_s22 = scalar_lea.vmem %s197_s21, 1024  ;;  %p760_p9 = scmp.lt.s32.totalorder %s197_s21, %s197_s21 }
  0x5a   : > { %p753_p5 = scmp.ne.s32.totalorder %s197_s21, %s752_s22  ;;  %p761_p10 = scmp.lt.s32.totalorder %s752_s22, %s752_s22 }
  0x5c   : > { %p755_p6 = pnand %p753_p5, %p989_p4  ;;  %p762_p12 = por %p761_p10, %p760_p9 }
  0x5e   : > { %p756_p8 = pneg %p755_p6 }
  0x60   : > { %p763_p1 = pnand %p762_p12, %p756_p8 }
  0x62   : > { %766 = shalt.err (!%p763_p1)
}
  0x63   : > { %s863_s23 = smov 64   ;;  %s864_s19 = smov 4  }
  0x64   : > { %595 = dma.hbm_to_vmem [thread:$0]  (!%p977_p2), %s1129_s3, 1024, %s197_s21, [#allocation9], %s863_s23, %s863_s23, %s864_s19  }
  0x65   : > { %p1144_p7 = scmp.ne.s32.totalorder %s1140_s16, 0 }
  0x66   : > { %p1145_p11 = scmp.ne.s32.totalorder (!%p1144_p7), %s1141_s17, 0 }
  0x67   : > { %215 = sbr.rel (%p1144_p7) target bundleno = 378 (0x17a), region = 36 }
  0x6e   : > { %822 = dma.done.wait (%p1145_p11), [#allocation6], 128  }
  0x6f   : > { %824 = vsyncadd (%p1145_p11), [#allocation6], 4294967168 }
  0x70   : > { %826 = dma.done.wait (%p1145_p11), [#allocation9], 2048  }
  0x71   : > { %828 = vsyncadd (%p1145_p11), [#allocation9], 4294965248  ;;  %s1052_s20 = sshll.u32 %s847_s6, 3  ;;  %v865_v0 = vmov 0.0   ;;  %vm866_vm0 = vmmov 0   ;;  %v665_v1 = vld [vmem:[#allocation10] sm:$0xff]  }
  0x72   : > { %552 = vmatprep.subr.bf16.mxu0 %v865_v0  ;;  %568 = vmatprep.mubr.msk.bf16.mxu0 %vm866_vm0, %v865_v0  ;;  %s248_s16 = sld [smem:[#allocation4 + %s1052_s20]]  ;;  %s252_s0 = sadd.s32 1, %s1052_s20  ;;  %v666_v2 = vld [vmem:[#allocation10 + $0x8] sm:$0xff]   ;;  %v667_v3 = vld [vmem:[#allocation10 + $0x10] sm:$0xff]   ;;  %v668_v10 = vld [vmem:[#allocation10 + $0x18] sm:$0xff]  }
  0x73   : > { %s253_s17 = sld [smem:[#allocation4 + %s252_s0]]  ;;  %s257_s21 = sadd.s32 2, %s1052_s20  ;;  %553 = vmatpush3.bf16.msra.mxu0 %v665_v1  ;;  %v669_v12 = vld [vmem:[#allocation10 + $0x20] sm:$0xff]   ;;  %v670_v14 = vld [vmem:[#allocation10 + $0x28] sm:$0xff]   ;;  %v671_v15 = vld [vmem:[#allocation10 + $0x30] sm:$0xff]  }
  0x74   : > { %s258_s24 = sld [smem:[#allocation4 + %s257_s21]]  ;;  %s262_s25 = sadd.s32 3, %s1052_s20  ;;  %554 = vmatprep.subr.bf16.mxu0 %v865_v0  ;;  %v289_v17 = vld [vmem:[#allocation5] sm:$0xff]  ;;  %v530_v22 = vld [vmem:[%s1130_s4] ss:$0 sm:$0xff] }
  0x75   : > { %s263_s26 = sld [smem:[#allocation4 + %s262_s25]]  ;;  %s267_s27 = sadd.s32 4, %s1052_s20  ;;  %v672_v18 = vld [vmem:[#allocation10 + $0x38] sm:$0xff]  }
  0x76   : > { %s268_s9 = sld [smem:[#allocation4 + %s267_s27]]  ;;  %s272_s11 = sadd.s32 5, %s1052_s20 }
  0x77   : > { %s273_s13 = sld [smem:[#allocation4 + %s272_s11]]  ;;  %s277_s22 = sadd.s32 6, %s1052_s20  ;;  %555 = vmatpush3.bf16.msra.mxu0 %v666_v2 }
  0x78   : > { %s278_s23 = sld [smem:[#allocation4 + %s277_s22]]  ;;  %556 = vmatprep.subr.bf16.mxu0 %v865_v0  ;;  %s282_s19 = sadd.s32 7, %s1052_s20 }
  0x79   : > { %s249_s18 = scalar_lea.vmem [#allocation8], %s248_s16  ;;  %s254_s10 = scalar_lea.vmem [#allocation8], %s253_s17 }
  0x7a   : > { %v250_v4 = vld [vmem:[%s249_s18] sm:$0x1]  ;;  %s259_s0 = scalar_lea.vmem [#allocation8], %s258_s24  ;;  %s283_s20 = sld [smem:[#allocation4 + %s282_s19]] }
  0x7b   : > { %v255_v5 = vld [vmem:[%s254_s10] sm:$0x1]  ;;  %251 = vst [vmem:[#allocation2] sm:$0x1] %v250_v4  ;;  %s264_s21 = scalar_lea.vmem [#allocation8], %s263_s26  ;;  %557 = vmatpush3.bf16.msra.mxu0 %v667_v3  ;;  %s241_s24 = sand.u32 1, %s839_s29  }
  0x7c   : > { %v260_v6 = vld [vmem:[%s259_s0] sm:$0x1]  ;;  %256 = vst [vmem:[#allocation2 + $0x1] sm:$0x1] %v255_v5  ;;  %s269_s25 = scalar_lea.vmem [#allocation8], %s268_s9  ;;  %558 = vmatprep.subr.bf16.mxu0 %v865_v0  ;;  %s528_s26 = sshll.u32 %s241_s24, 3 }
  0x7d   : > { %261 = vst [vmem:[#allocation2 + $0x2] sm:$0x1] %v260_v6  ;;  %v265_v7 = vld [vmem:[%s264_s21] sm:$0x1]  ;;  %s274_s27 = scalar_lea.vmem [#allocation8], %s273_s13  ;;  %s540_s13 = sshll.u32 %s847_s6, 7 }
  0x7e   : > { %v270_v8 = vld [vmem:[%s269_s25] sm:$0x1]  ;;  %266 = vst [vmem:[#allocation2 + $0x3] sm:$0x1] %v265_v7  ;;  %s279_s16 = scalar_lea.vmem [#allocation8], %s278_s23  ;;  %s243_s22 = scalar_lea.vmem [#allocation11], %s528_s26 }
  0x7f   : > { %v275_v9 = vld [vmem:[%s274_s27] sm:$0x1]  ;;  %271 = vst [vmem:[#allocation2 + $0x4] sm:$0x1] %v270_v8  ;;  %559 = vmatpush3.bf16.msra.mxu0 %v668_v10  ;;  %s421_s23 = sshll.u32 %s243_s22, 4  ;;  %s1079_s10 = scalar_lea.hbm %s1131_s5, %s540_s13  ;;  %s1081_s23 = int_to_ptr.vmem [resolvable:$true] %s421_s23 }
  0x80   : > { %276 = vst [vmem:[#allocation2 + $0x5] sm:$0x1] %v275_v9  ;;  %v280_v11 = vld [vmem:[%s279_s16] sm:$0x1]  ;;  %560 = vmatprep.subr.bf16.mxu0 %v865_v0  ;;  %s284_s17 = scalar_lea.vmem [#allocation8], %s283_s20  ;;  %s407_s0 = scalar_lea.sflag [#allocation7], %s241_s24 }
  0x81   : > { %281 = vst [vmem:[#allocation2 + $0x6] sm:$0x1] %v280_v11  ;;  %v285_v13 = vld [vmem:[%s284_s17] sm:$0x1]  ;;  %s767_s21 = scalar_lea.vmem %s1081_s23, 128  ;;  %p1146_p4 = scmp.ne.s32.totalorder %s1138_s12, 0 }
  0x82   : > { %286 = vst [vmem:[#allocation2 + $0x7] sm:$0x1] %v285_v13  ;;  %p768_p2 = scmp.ne.s32.totalorder %s1081_s23, %s767_s21  ;;  %s867_s6 = smov [#allocation11]  }
  0x83   : > { %561 = vmatpush3.bf16.msra.mxu0 %v669_v12  ;;  %s771_s25 = sshll.u32 %s867_s6, 4  ;;  %s772_s25 = int_to_ptr.vmem [resolvable:$false] %s771_s25 }
  0x84   : > { %562 = vmatprep.subr.bf16.mxu0 %v865_v0  ;;  %p769_p13 = pnand %p768_p2, %p1146_p4  ;;  %s773_s27 = scalar_lea.vmem %s772_s25, 256 }
  0x85   : > { %p774_p3 = scmp.lt.s32.totalorder %s1081_s23, %s772_s25  ;;  %p775_p5 = scmp.lt.s32.totalorder %s773_s27, %s767_s21 }
  0x86   : > { %p770_p0 = pneg %p769_p13 }
  0x87   : > { %563 = vmatpush3.bf16.msra.mxu0 %v670_v14  ;;  %p776_p6 = por %p775_p5, %p774_p3 }
  0x88   : > { %564 = vmatprep.subr.bf16.mxu0 %v865_v0 }
  0x89   : > { %v287_v16 = vld [vmem:[#allocation2] sm:$0xff]  ;;  %p777_p8 = pnand %p776_p6, %p770_p0 }
  0x8a   : > { %v288_v19 = vmul.f32 5.656854, %v287_v16 }
  0x8b   : > { %565 = vmatpush3.bf16.msra.mxu0 %v671_v15 }
  0x8c   : > { %566 = vmatprep.subr.bf16.mxu0 %v865_v0  ;;  %v290_v20 = vadd.f32 %v289_v17, %v288_v19 }
  0x8e   : > { %v291_v21 = vpack.c.bf16 %v290_v20, %v290_v20 }
  0x8f   : > { %567 = vmatpush3.bf16.msra.mxu0 %v672_v18 }
  0x92   : > { %569 = vmatmul.mubr.bf16.vlgmr.msra.gmra.mrb[0].mxu0 %v291_v21 }
 0x165   : > { %v397_v23 = vpop.f32.mrb[0].mxu0 }
 0x166   : > { %v398_v24 = vadd.f32 %v530_v22, %v397_v23  ;;  %v570_v25 = vpop.f32.mrb[1].mxu0 }
 0x167   : > { %v400_v26 = vpop.f32.mrb[2].mxu0 }
 0x168   : > { %v403_v27 = vadd.f32 1.0, %v398_v24  ;;  %v571_v28 = vpop.f32.mrb[3].mxu0 }
 0x16a   : > { %v404_v29 = vmul.f32 %v403_v27, %v290_v20 }
 0x16c   : > { %405 = vst [vmem:[%s243_s22] sm:$0xff] %v404_v29 }
 0x16d   : > { %780 = shalt.err (!%p777_p8)
}
 0x16e   : > { %s781_s20 = scalar_lea.hbm %s1079_s10, 128  ;;  %s785_s24 = scalar_lea.hbm %s1131_s5, 256 }
 0x16f   : > { %p782_p9 = scmp.ne.s32.totalorder %s1079_s10, %s781_s20  ;;  %p786_p1 = scmp.lt.u32.totalorder %s1079_s10, %s1131_s5 }
 0x170   : > { %p787_p7 = scmp.lt.u32.totalorder %s785_s24, %s781_s20  ;;  %p789_p2 = scmp.lt.u32.totalorder %s781_s20, %s1079_s10 }
 0x171   : > { %p783_p10 = pnand %p782_p9, %p1146_p4 }
 0x172   : > { %p788_p11 = por %p787_p7, %p786_p1 }
 0x173   : > { %p784_p12 = pneg %p783_p10 }
 0x174   : > { %p790_p13 = por %p789_p2, %p788_p11 }
 0x176   : > { %p791_p0 = pnand %p790_p13, %p784_p12 }
 0x178   : > { %794 = shalt.err (!%p791_p0)
}
 0x179   : > { %584 = dma.vmem_to_hbm [thread:$0]  (%p1146_p4), %s1081_s23, 128, %s1079_s10, %s407_s0  }
 0x17a PF: > { %p606_p3 = scmp.ge.s32.totalorder %s855_s8, 2  ;;  %s433_s11 = sand.u32 1, %s835_s28  }
 0x17b   : > { %p1147_p5 = scmp.ne.s32.totalorder %s1139_s14, 0  ;;  %s434_s13 = scalar_lea.sflag [#allocation7], %s433_s11 }
 0x17d   : > { %p597_p6 = pnand %p606_p3, %p1147_p5 }
 0x17f   : > { %830 = dma.done.wait (!%p597_p6), %s434_s13, 128  }
 0x180   : > { %832 = vsyncadd (!%p597_p6), %s434_s13, 4294967168  ;;  %s24_s8 = sadd.s32 1, %s855_s8   ;;  %s1148_s12 = sld [smem:[#allocation16_spill]] }
 0x181   : > { %p21_p8 = scmp.ge.s32.totalorder %s24_s8, 4   ;;  %s1149_s28 = smov %s839_s29 }
 0x182   : > { %s1150_s29 = smov %s843_s30  ;;  %s1151_s30 = smov %s963_s15 }
 0x183   : > { %s1152_s6 = smov %s851_s7  ;;  %23 = sbr.rel (!%p21_p8) target bundleno = 18 (0x12), region = 90 }
 0x186   : > { %s1153_s7 = smov %s1148_s12 }
 0x18a   :  { %439 = vsyncpa [#allocation6], 1 }
 0x18b   :  { %441 = vsyncpa [#allocation6 + $0x1], 1 }
 0x18c   :  { %442 = vsyncpa [#allocation9], 1 }
 0x18d   :  { %443 = vsyncpa [#allocation7], 1 }
 0x18e   :  { %445 = vsyncpa [#allocation7 + $0x1], 1 }

</bundles_post_ra>
